<compile_context>
chip_gen: v6e
topology: v6e:2x2x1
jax: 0.10.0
libtpu: 0.0.40
codegen_flags: <defaults>
</compile_context>

<pallas_src>
import math

import jax
import jax.numpy as jnp
from jax.experimental import pallas as pl
from jax.experimental.pallas import tpu as pltpu


def _round_up(x, m):
    return ((x + m - 1) // m) * m


def _fused_heads_kernel(x_ref, w_ref, b_ref, o_ref):
    # x_ref: (tb, D)    batch tile (compute dtype)
    # w_ref: (D, tn)    fused-head weights, pre-transposed & N-padded
    # b_ref: (1, tn)    fused-head biases (f32)
    # o_ref: (tb, tn)   lane-dense f32 output tile
    y = jnp.dot(x_ref[...], w_ref[...], preferred_element_type=jnp.float32)
    o_ref[...] = (y + b_ref[...]).astype(o_ref.dtype)


def prepare_cluster_heads(weights, biases, *, compute_dtype=jnp.bfloat16):
    """One-time parameter prep (hoisted out of the per-call forward path).

    weights: (nheads, C, D) float32  -- PyTorch nn.Linear .weight layout
    biases:  (nheads, C)    float32
    Returns the fused, transposed, N-padded, dtype-cast parameters.
    """
    nheads, C, D = weights.shape
    assert biases.shape == (nheads, C)
    N = nheads * C
    # Lane-dense output: pad N to 128; to 256 when larger (full v6e/v7x MXU pass).
    Npad = _round_up(N, 128) if N <= 128 else _round_up(N, 256)

    w = jnp.transpose(weights.reshape(N, D))          # (D, N) -- once, at init
    b = biases.reshape(1, N).astype(jnp.float32)      # bias add stays f32
    if Npad != N:
        w = jnp.pad(w, ((0, 0), (0, Npad - N)))
        b = jnp.pad(b, ((0, 0), (0, Npad - N)))
    if compute_dtype is not None:
        w = w.astype(compute_dtype)
    return {"w": w, "b": b, "nheads": nheads, "nclusters": C, "N": N}


def cluster_heads_forward(x, prepared, *, block_b=1024, block_n=None):
    """Pallas forward for forward_pass='head_i', all heads fused.

    x:        (B, D) array (cast to the prepared compute dtype if needed; pass
              bf16 x from upstream to get the full HBM-bandwidth win).
    prepared: output of prepare_cluster_heads().
    returns:  (B, nheads, C) f32 with out[:, h, :] == x @ W[h].T + b[h]
              (kept stacked instead of a Python list to avoid per-head copies).
    """
    w, b = prepared["w"], prepared["b"]
    nheads, C, N = prepared["nheads"], prepared["nclusters"], prepared["N"]
    B, D = x.shape
    Dw, Npad = w.shape
    assert D == Dw

    if x.dtype != w.dtype:
        x = x.astype(w.dtype)
    x_item = x.dtype.itemsize
    w_item = w.dtype.itemsize

    # --- batch tiling: sublane-packed tiles, >=2 blocks when possible (v7x TCs)
    sub = 8 * max(1, 4 // x_item)                 # 8 f32 / 16 bf16 / 32 8-bit
    tb = _round_up(max(sub, min(block_b, B)), sub)
    if B >= 2 * sub and pl.cdiv(B, tb) < 2:
        tb = _round_up(pl.cdiv(B, 2), sub)

    # --- head/cluster (N) tiling: keep resident weight/output tiles VMEM-friendly
    if block_n is None:
        block_n = max(128, ((4 << 20) // (D * w_item)) // 128 * 128)
    tn = min(Npad, block_n)

    def vmem_needed(tb_, tn_):
        return (2 * tb_ * D * x_item        # x tiles (double-buffered)
                + 2 * D * tn_ * w_item      # weight tiles
                + 2 * tn_ * 4               # bias tiles
                + 2 * tb_ * tn_ * 4)        # f32 output tiles

    while vmem_needed(tb, tn) > (40 << 20) and tb > sub:
        tb = max(sub, _round_up(tb // 2, sub))

    grid_b = pl.cdiv(B, tb)   # ragged last block padded by Pallas (no jnp.pad of x)
    grid_n = pl.cdiv(Npad, tn)
    vmem_limit = min(int(1.5 * vmem_needed(tb, tn)) + (2 << 20), 64 << 20)

    out = pl.pallas_call(
        _fused_heads_kernel,
        out_shape=jax.ShapeDtypeStruct((B, Npad), jnp.float32),
        grid_spec=pltpu.PrefetchScalarGridSpec(
            num_scalar_prefetch=0,
            grid=(grid_b, grid_n),
            in_specs=[
                pl.BlockSpec((tb, D), lambda i, j: (i, 0)),   # batch tile
                pl.BlockSpec((D, tn), lambda i, j: (0, j)),   # fused weights
                pl.BlockSpec((1, tn), lambda i, j: (0, j)),   # fused biases
            ],
            out_specs=pl.BlockSpec((tb, tn), lambda i, j: (i, j)),
        ),
        compiler_params=pltpu.CompilerParams(
            dimension_semantics=("parallel", "parallel"),
            vmem_limit_bytes=vmem_limit,
        ),
        cost_estimate=pl.CostEstimate(
            flops=2 * B * Npad * D,
            transcendentals=0,
            bytes_accessed=(B * D * x_item + D * Npad * w_item
                            + Npad * 4 + B * Npad * 4),
        ),
    )(x, w, b)

    if Npad != N:
        out = out[:, :N]
    # Zero-copy split of the lane-dense (B, N) slab into per-head slots.
    return out.reshape(B, nheads, C)


def init_cluster_heads(key, nheads, nclusters, backbone_dim):
    """Deterministic init mimicking nn.Linear default (uniform +/- 1/sqrt(in))."""
    kw, kb = jax.random.split(key)
    bound = 1.0 / math.sqrt(backbone_dim)
    weights = jax.random.uniform(
        kw, (nheads, nclusters, backbone_dim), jnp.float32, -bound, bound)
    biases = jax.random.uniform(
        kb, (nheads, nclusters), jnp.float32, -bound, bound)
    return weights, biases


if __name__ == "__main__":
    # Shapes implied by the module: backbone_dim=512; small batch / clusters.
    B, BACKBONE_DIM, NCLUSTERS, NHEADS = 64, 512, 10, 3

    key = jax.random.PRNGKey(0)
    kx, kp = jax.random.split(key)
    x = jax.random.normal(kx, (B, BACKBONE_DIM), jnp.float32)
    weights, biases = init_cluster_heads(kp, NHEADS, NCLUSTERS, BACKBONE_DIM)

    # Default path: bf16 compute (f32 accumulate), params prepared once at init.
    prep_bf16 = prepare_cluster_heads(weights, biases)
    out = jax.block_until_ready(cluster_heads_forward(x, prep_bf16))
    assert out.shape == (B, NHEADS, NCLUSTERS)
    for h in range(NHEADS):
        ref = x @ weights[h].T + biases[h]
        assert jnp.allclose(out[:, h, :], ref, atol=5e-2, rtol=5e-2), (
            f"head {h} mismatch (bf16)")

    # Exact f32 path: matches nn.Linear math.
    prep_f32 = prepare_cluster_heads(weights, biases, compute_dtype=jnp.float32)
    out32 = jax.block_until_ready(cluster_heads_forward(x, prep_f32))
    for h in range(NHEADS):
        ref = x @ weights[h].T + biases[h]
        assert jnp.allclose(out32[:, h, :], ref, atol=1e-4, rtol=1e-4), (
            f"head {h} mismatch (f32)")

    # Ragged batch (B not a multiple of the tile): handled without jnp.pad of x.
    xr = x[:50]
    outr = jax.block_until_ready(cluster_heads_forward(xr, prep_f32))
    for h in range(NHEADS):
        ref = xr @ weights[h].T + biases[h]
        assert jnp.allclose(outr[:, h, :], ref, atol=1e-4, rtol=1e-4), (
            f"head {h} mismatch (ragged B)")

    print("KERNEL_OK")
</pallas_src>

<mosaic_0001>
module attributes {stable_mosaic.version = 11 : i64} {
  func.func @_fused_heads_kernel(%arg0: i32, %arg1: i32, %arg2: memref<32x512xbf16, #tpu.memory_space<vmem>>, %arg3: memref<512x128xbf16, #tpu.memory_space<vmem>>, %arg4: memref<1x128xf32, #tpu.memory_space<vmem>>, %arg5: memref<32x128xf32, #tpu.memory_space<vmem>>) attributes {dimension_semantics = [#tpu.dimension_semantics<parallel>, #tpu.dimension_semantics<parallel>], iteration_bounds = array<i64: 2, 1>, scalar_prefetch = 0 : i64, scratch_operands = 0 : i64, tpu.core_type = #tpu.core_type<tc>, window_params = [{transform_indices = @transform_0, window_bounds = array<i64: 32, 512>}, {transform_indices = @transform_1, window_bounds = array<i64: 512, 128>}, {transform_indices = @transform_2, window_bounds = array<i64: 1, 128>}, {transform_indices = @transform_3, window_bounds = array<i64: 32, 128>}]} {
    %c0 = arith.constant 0 : index
    %c0_0 = arith.constant 0 : index
    %0 = vector.load %arg2[%c0, %c0_0] : memref<32x512xbf16, #tpu.memory_space<vmem>>, vector<32x512xbf16>
    %c0_1 = arith.constant 0 : index
    %c0_2 = arith.constant 0 : index
    %1 = vector.load %arg3[%c0_1, %c0_2] : memref<512x128xbf16, #tpu.memory_space<vmem>>, vector<512x128xbf16>
    %cst = arith.constant dense<0.000000e+00> : vector<32x128xf32>
    %2 = tpu.matmul %0, %1, %cst {dimension_numbers = #tpu.dot_dimension_numbers<[1], [0], [0], [1], [0, 0, 1, 1], [], []>} : vector<32x512xbf16>, vector<512x128xbf16>, vector<32x128xf32> -> vector<32x128xf32>
    %c0_3 = arith.constant 0 : index
    %c0_4 = arith.constant 0 : index
    %3 = vector.load %arg4[%c0_3, %c0_4] : memref<1x128xf32, #tpu.memory_space<vmem>>, vector<1x128xf32>
    %4 = vector.broadcast %3 : vector<1x128xf32> to vector<32x128xf32>
    %5 = arith.addf %2, %4 : vector<32x128xf32>
    %c0_5 = arith.constant 0 : index
    %c0_6 = arith.constant 0 : index
    %6 = vector.load %arg5[%c0_5, %c0_6] : memref<32x128xf32, #tpu.memory_space<vmem>>, vector<32x128xf32>
    tpu.vector_store %arg5[%c0_5, %c0_6], %5 {strides = array<i32>} : memref<32x128xf32, #tpu.memory_space<vmem>>, vector<32x128xf32>,
    return
  }
  func.func @transform_0(%arg0: i32, %arg1: i32) -> (i32, i32) {
    %c0_i32 = arith.constant 0 : i32
    %c0_i32_0 = arith.constant 0 : i32
    return %arg0, %c0_i32 : i32, i32
  }
  func.func @transform_1(%arg0: i32, %arg1: i32) -> (i32, i32) {
    %c0_i32 = arith.constant 0 : i32
    %c0_i32_0 = arith.constant 0 : i32
    return %c0_i32, %arg1 : i32, i32
  }
  func.func @transform_2(%arg0: i32, %arg1: i32) -> (i32, i32) {
    %c0_i32 = arith.constant 0 : i32
    %c0_i32_0 = arith.constant 0 : i32
    return %c0_i32, %arg1 : i32, i32
  }
  func.func @transform_3(%arg0: i32, %arg1: i32) -> (i32, i32) {
    %c0_i32 = arith.constant 0 : i32
    return %arg0, %arg1 : i32, i32
  }
}

</mosaic_0001>

<bundles_post_ra>
// kernel: tpu_custom_call.1
= control target key start
LH: loop header
LB: loop body
LE: loop exit
PB: predicated region body
PF: predicated region fallthrough
CT: control target
= control target key end

     0   :  { %8 = vsyncpa [#allocation3], 0  ;;  %s1384_s0 = inlined_call_operand.hbm [shape: bf16[64,512], index: 0, kind: input, shape index: {}]   ;;  %s1385_s1 = inlined_call_operand.hbm [shape: bf16[512,128], index: 1, kind: input, shape index: {}]   ;;  %s1386_s2 = inlined_call_operand.vmem [shape: f32[1,128], index: 2, kind: input, shape index: {}]   ;;  %s1387_s3 = inlined_call_operand.hbm [shape: f32[64,128], index: 3, kind: output, shape index: {}]  }
   0x1   :  { %10 = vsyncpa [#allocation3 + $0x1], 0 }
   0x2   :  { %11 = vsyncpa [#allocation6], 0 }
   0x3   :  { %12 = vsyncpa [#allocation4], 0 }
   0x4   :  { %14 = vsyncpa [#allocation4 + $0x1], 0  ;;  %s1189_s12 = smov 0   ;;  %s1191_s13 = smov 0  }
   0x5   :  { %s1193_s14 = smov 0   ;;  %s1195_s15 = smov 0  }
   0x6   :  { %s1197_s16 = smov 0   ;;  %s1199_s17 = smov 0  }
   0x7 LB: > { %s778_s18 = sadd.s32 4294967295, %s1158_s17   ;;  %s779_s19 = sadd.s32 4294967294, %s1158_s17   ;;  %s1158_s17 = sphi %s1199_s17, %s20_s17   ;;  %s1154_s16 = sphi %s1197_s16, %s1405_s16   ;;  %s1150_s15 = sphi %s1195_s15, %s1404_s15   ;;  %s1146_s14 = sphi %s1193_s14, %s1403_s14   ;;  %s1142_s13 = sphi %s1191_s13, %s1402_s13   ;;  %s1138_s12 = sphi %s1189_s12, %s1401_s12  }
   0x8   : > { %p52_p0 = scmp.ne.s32.totalorder %s1142_s13, %s1138_s12  ;;  %p1223_p1 = scmp.eq.s32.totalorder %s778_s18, 0 }
   0x9   : > { %p1227_p2 = scmp.eq.s32.totalorder %s778_s18, 1  ;;  %p136_p3 = scmp.eq.s32.totalorder %s779_s19, 1 }
   0xa   : > { %p1233_p4 = por %p1223_p1, %p52_p0  ;;  %p780_p5 = scmp.ge.s32.totalorder %s1158_s17, 1 }
   0xb   : > { %p1238_p6 = por %p136_p3, %p52_p0  ;;  %p143_p7 = scmp.lt.s32.totalorder %s1158_s17, 3 }
   0xc   : > { %s1391_s22 = scalar_select %p1233_p4, 1, 0 }
   0xd   : > { %s1392_s23 = scalar_select %p1238_p6, 1, 0 }
   0xe   : > { %p1243_p8 = pnand %p780_p5, %p143_p7  ;;  %s1160_s25 = smov [#allocation5]  }
   0xf   : > { %s157_s26 = sshll.u32 %s1160_s25, 4  ;;  %s32_s28 = sadd.s32 1, %s1154_s16  ;;  %s158_s26 = int_to_ptr.vmem [resolvable:$true] %s157_s26 }
  0x10   : > { %p905_p9 = pneg %p1243_p8  ;;  %s1031_s29 = scalar_lea.vmem %s158_s26, 4096 }
  0x11   : > { %p1032_p13 = scmp.ne.s32.totalorder %s158_s26, %s1031_s29  ;;  %p1039_p5 = scmp.lt.s32.totalorder %s158_s26, %s158_s26 }
  0x12   : > { %p1252_p11 = pnand %p905_p9, %p1223_p1  ;;  %p1040_p7 = scmp.lt.s32.totalorder %s1031_s29, %s1031_s29 }
  0x14   : > { %p1022_p12 = pneg %p1252_p11  ;;  %p1041_p6 = por %p1040_p7, %p1039_p5 }
  0x16   : > { %p1034_p0 = pnand %p1032_p13, %p1022_p12 }
  0x18   : > { %p1035_p3 = pneg %p1034_p0 }
  0x1a   : > { %p1042_p4 = pnand %p1041_p6, %p1035_p3 }
  0x1c   : > { %1045 = shalt.err (!%p1042_p4)
}
  0x1d   : > { %s1161_s30 = smov 64   ;;  %s1162_s4 = smov 4  }
  0x1e   : > { %908 = dma.hbm_to_vmem [thread:$0]  (!%p1252_p11), %s1385_s1, 4096, %s158_s26, [#allocation6], %s1161_s30, %s1161_s30, %s1162_s4  }
  0x1f   : > { %p34_p6 = scmp.ge.s32.totalorder %s32_s28, 2  ;;  %s39_s7 = sadd.s32 1, %s1146_s14 }
  0x20   : > { %p46_p4 = scmp.ne.s32.totalorder %s1146_s14, %s1142_s13  ;;  %p47_p9 = scmp.eq.s32.totalorder %s1158_s17, 0 }
  0x21   : > { %s1407_s28 = smov (%p34_p6, %s32_s28), 0  ;;  %p918_p0 = scmp.lt.s32.totalorder %s1158_s17, 2 }
  0x22   : > { %p1270_p12 = por %p47_p9, %p46_p4  ;;  %p1276_p13 = por %p1227_p2, %p46_p4 }
  0x23   : > { %s36_s10 = ssub.s32 %s1154_s16, %s1407_s28  ;;  %s177_s11 = sand.u32 1, %s1146_s14  }
  0x24   : > { %p37_p11 = scmp.eq.s32.totalorder %s36_s10, 0  ;;  %s784_s18 = sshll.u32 %s177_s11, 6 }
  0x25   : > { %s839_s25 = sshll.u32 %s1154_s16, 10  ;;  %s181_s30 = scalar_lea.vmem [#allocation2], %s784_s18 }
  0x26   : > { %s1285_s19 = scalar_select %p37_p11, %s1146_s14, %s39_s7  }
  0x27   : > { %s188_s29 = scalar_lea.hbm %s1384_s0, %s839_s25  ;;  %s189_s4 = sshll.u32 %s181_s30, 4  ;;  %s190_s4 = int_to_ptr.vmem [resolvable:$true] %s189_s4 }
  0x28   : > { %p1293_p2 = pnand %p918_p0, %p1270_p12  ;;  %s178_s5 = scalar_lea.sflag [#allocation3], %s177_s11 }
  0x29   : > { %s1059_s6 = scalar_lea.vmem %s190_s4, 1024  ;;  %s1163_s7 = smov [#allocation2]  }
  0x2a   : > { %p1048_p3 = pneg %p1293_p2  ;;  %p1060_p5 = scmp.ne.s32.totalorder %s190_s4, %s1059_s6 }
  0x2b   : > { %s1064_s10 = sshll.u32 %s1163_s7, 4  ;;  %s1065_s10 = int_to_ptr.vmem [resolvable:$false] %s1064_s10 }
  0x2c   : > { %p1062_p7 = pnand %p1060_p5, %p1048_p3  ;;  %s1066_s25 = scalar_lea.vmem %s1065_s10, 2048 }
  0x2d   : > { %p1067_p4 = scmp.lt.s32.totalorder %s190_s4, %s1065_s10  ;;  %p1068_p9 = scmp.lt.s32.totalorder %s1066_s25, %s1059_s6 }
  0x2e   : > { %p1063_p6 = pneg %p1062_p7 }
  0x2f   : > { %p1069_p11 = por %p1068_p9, %p1067_p4 }
  0x31   : > { %p1070_p10 = pnand %p1069_p11, %p1063_p6 }
  0x33   : > { %1073 = shalt.err (!%p1070_p10)
}
  0x34   : > { %s1164_s8 = smov 256   ;;  %s1165_s18 = smov 16  }
  0x35   : > { %912 = dma.hbm_to_vmem [thread:$0]  (!%p1293_p2), %s188_s29, 1024, %s190_s4, %s178_s5, %s1164_s8, %s1164_s8, %s1165_s18  }
  0x36   : > { %201 = sbr.rel (%p1243_p8) target bundleno = 323 (0x143), region = 32  ;;  %s1304_s11 = sand.u32 (!%p1243_p8), 1, %s1142_s13  }
  0x37   : > { %s789_s26 = sshll.u32 (!%p1243_p8), %s1304_s11, 6  ;;  %s204_s27 = scalar_lea.sflag (!%p1243_p8), [#allocation3], %s1304_s11 }
  0x38   : > { %s1308_s30 = scalar_lea.vmem (!%p1243_p8), [#allocation2], %s789_s26  ;;  %p1398_p12 = scmp.ne.s32.totalorder (!%p1243_p8), %s1391_s22, 0 }
  0x3b   : > { %1125 = dma.done.wait (%p1398_p12), %s204_s27, 1024  }
  0x3c   : > { %1127 = vsyncadd (%p1398_p12), %s204_s27, 4294966272 }
  0x3d   : > { %1129 = dma.done.wait (%p1223_p1), [#allocation6], 4096  }
  0x3e   : > { %1131 = vsyncadd (%p1223_p1), [#allocation6], 4294963200  ;;  %v976_v0 = vld [vmem:[#allocation5 + $0x78] sm:$0xff]   ;;  %v980_v4 = vld [vmem:[#allocation5 + $0x70] sm:$0xff]   ;;  %s791_s24 = sshll.u32 %s1304_s11, 5  ;;  %s840_s21 = sshll.u32 %s1150_s15, 9 }
  0x3f   : > { %v977_v1 = vld [vmem:[#allocation5 + $0xf8] sm:$0xff]   ;;  %841 = vmatprep.subr.bf16.mxu0 %v976_v0  ;;  %v981_v5 = vld [vmem:[#allocation5 + $0xf0] sm:$0xff]   ;;  %v984_v8 = vld [vmem:[#allocation5 + $0x68] sm:$0xff]   ;;  %s236_s29 = scalar_lea.vmem [#allocation7], %s791_s24  ;;  %s1336_s7 = scalar_lea.hbm %s1387_s3, %s840_s21 }
  0x40   : > { %v978_v2 = vld [vmem:[#allocation5 + $0x38] sm:$0xff]   ;;  %869 = vmatprep.subr.bf16.mxu1 %v977_v1  ;;  %v982_v6 = vld [vmem:[#allocation5 + $0x30] sm:$0xff]   ;;  %v985_v9 = vld [vmem:[#allocation5 + $0xe8] sm:$0xff]   ;;  %s671_s4 = sshll.u32 %s236_s29, 4  ;;  %s657_s10 = scalar_lea.sflag [#allocation4], %s1304_s11  ;;  %s1331_s4 = int_to_ptr.vmem [resolvable:$true] %s671_s4 }
  0x41   : > { %v979_v3 = vld [vmem:[#allocation5 + $0xb8] sm:$0xff]   ;;  %842 = vmatpush3.bf16.msra.mxu0 %v978_v2  ;;  %v983_v7 = vld [vmem:[#allocation5 + $0xb0] sm:$0xff]   ;;  %v986_v10 = vld [vmem:[#allocation5 + $0x28] sm:$0xff]   ;;  %s1074_s25 = scalar_lea.vmem %s1331_s4, 512  ;;  %s1166_s15 = smov [#allocation7]  }
  0x42   : > { %870 = vmatpush3.bf16.msra.mxu1 %v979_v3  ;;  %843 = vmatprep.subr.bf16.mxu0 %v980_v4  ;;  %v987_v11 = vld [vmem:[#allocation5 + $0xa8] sm:$0xff]   ;;  %v988_v12 = vld [vmem:[#allocation5 + $0x60] sm:$0xff]   ;;  %v992_v16 = vld [vmem:[#allocation5 + $0x58] sm:$0xff]   ;;  %p1075_p1 = scmp.ne.s32.totalorder %s1331_s4, %s1074_s25  ;;  %s1078_s8 = sshll.u32 %s1166_s15, 4  ;;  %s1079_s8 = int_to_ptr.vmem [resolvable:$false] %s1078_s8 }
  0x43   : > { %871 = vmatprep.subr.bf16.mxu1 %v981_v5  ;;  %v989_v13 = vld [vmem:[#allocation5 + $0xe0] sm:$0xff]   ;;  %v993_v17 = vld [vmem:[#allocation5 + $0xd8] sm:$0xff]   ;;  %v996_v20 = vld [vmem:[#allocation5 + $0x50] sm:$0xff]   ;;  %s1080_s18 = scalar_lea.vmem %s1079_s8, 1024  ;;  %p1081_p0 = scmp.lt.s32.totalorder %s1331_s4, %s1079_s8 }
  0x44   : > { %v990_v14 = vld [vmem:[#allocation5 + $0x20] sm:$0xff]   ;;  %v994_v18 = vld [vmem:[#allocation5 + $0x18] sm:$0xff]   ;;  %v997_v21 = vld [vmem:[#allocation5 + $0xd0] sm:$0xff]   ;;  %p1076_p8 = pnand %p1075_p1, %p1276_p13  ;;  %p1082_p2 = scmp.lt.s32.totalorder %s1080_s18, %s1074_s25 }
  0x45   : > { %844 = vmatpush3.bf16.msra.mxu0 %v982_v6  ;;  %v991_v15 = vld [vmem:[#allocation5 + $0xa0] sm:$0xff]   ;;  %v995_v19 = vld [vmem:[#allocation5 + $0x98] sm:$0xff]   ;;  %v998_v22 = vld [vmem:[#allocation5 + $0x10] sm:$0xff]  }
  0x46   : > { %872 = vmatpush3.bf16.msra.mxu1 %v983_v7  ;;  %845 = vmatprep.subr.bf16.mxu0 %v984_v8  ;;  %v999_v23 = vld [vmem:[#allocation5 + $0x90] sm:$0xff]   ;;  %v1000_v24 = vld [vmem:[#allocation5 + $0x48] sm:$0xff]   ;;  %v1004_v28 = vld [vmem:[#allocation5 + $0x40] sm:$0xff]   ;;  %p1077_p10 = pneg %p1076_p8  ;;  %p1083_p3 = por %p1082_p2, %p1081_p0 }
  0x47   : > { %873 = vmatprep.subr.bf16.mxu1 %v985_v9  ;;  %v1001_v25 = vld [vmem:[#allocation5 + $0xc8] sm:$0xff]   ;;  %v1005_v29 = vld [vmem:[#allocation5 + $0xc0] sm:$0xff]  }
  0x48   : > { %v1002_v26 = vld [vmem:[#allocation5 + $0x8] sm:$0xff]   ;;  %v1006_v30 = vld [vmem:[#allocation5] sm:$0xff]   ;;  %p1084_p5 = pnand %p1083_p3, %p1077_p10 }
  0x49   : > { %846 = vmatpush3.bf16.msra.mxu0 %v986_v10  ;;  %v1003_v27 = vld [vmem:[#allocation5 + $0x88] sm:$0xff]   ;;  %v1007_v31 = vld [vmem:[#allocation5 + $0x80] sm:$0xff]  }
  0x4a   : > { %874 = vmatpush3.bf16.msra.mxu1 %v987_v11  ;;  %847 = vmatprep.subr.bf16.mxu0 %v988_v12  ;;  %v1008_v32 = vld [vmem:[%s1308_s30] ss:$16 sps:$4 sm:$0xff]   ;;  %v1010_v33 = vld [vmem:[%s1308_s30 + $0x4] ss:$16 sps:$4 sm:$0xff]   ;;  %v1011_v34 = vld [vmem:[%s1308_s30 + $0x8] ss:$16 sps:$4 sm:$0xff]  }
  0x4b   : > { %875 = vmatprep.subr.bf16.mxu1 %v989_v13  ;;  %v1013_v35 = vld [vmem:[%s1308_s30 + $0xc] ss:$16 sps:$4 sm:$0xff]   ;;  %586 = vmatprep.mubr.bf16.mxu0 %v1010_v33  ;;  %v1014_v36 = vld [vmem:[%s1308_s30 + $0x24] ss:$16 sps:$4 sm:$0xff]   ;;  %v1018_v38 = vld [vmem:[%s1308_s30 + $0x20] ss:$16 sps:$4 sm:$0xff]  }
  0x4c   : > { %635 = vmatprep.mubr.bf16.mxu1 %v1013_v35  ;;  %v1016_v37 = vld [vmem:[%s1308_s30 + $0x2c] ss:$16 sps:$4 sm:$0xff]   ;;  %v1019_v39 = vld [vmem:[%s1308_s30 + $0x28] ss:$16 sps:$4 sm:$0xff]   ;;  %v792_v42 = vld [vmem:[%s1386_s2] ss:$0 sm:$0xff] }
  0x4d   : > { %848 = vmatpush3.bf16.msra.mxu0 %v990_v14 }
  0x4e   : > { %876 = vmatpush3.bf16.msra.mxu1 %v991_v15  ;;  %849 = vmatprep.subr.bf16.mxu0 %v992_v16 }
  0x4f   : > { %877 = vmatprep.subr.bf16.mxu1 %v993_v17 }
  0x51   : > { %850 = vmatpush3.bf16.msra.mxu0 %v994_v18 }
  0x52   : > { %878 = vmatpush3.bf16.msra.mxu1 %v995_v19  ;;  %851 = vmatprep.subr.bf16.mxu0 %v996_v20 }
  0x53   : > { %879 = vmatprep.subr.bf16.mxu1 %v997_v21 }
  0x55   : > { %852 = vmatpush3.bf16.msra.mxu0 %v998_v22 }
  0x56   : > { %880 = vmatpush3.bf16.msra.mxu1 %v999_v23  ;;  %853 = vmatprep.subr.bf16.mxu0 %v1000_v24 }
  0x57   : > { %881 = vmatprep.subr.bf16.mxu1 %v1001_v25 }
  0x59   : > { %854 = vmatpush3.bf16.msra.mxu0 %v1002_v26 }
  0x5a   : > { %882 = vmatpush3.bf16.msra.mxu1 %v1003_v27  ;;  %855 = vmatprep.subr.bf16.mxu0 %v1004_v28 }
  0x5b   : > { %883 = vmatprep.subr.bf16.mxu1 %v1005_v29 }
  0x5d   : > { %856 = vmatpush3.bf16.msra.mxu0 %v1006_v30 }
  0x5e   : > { %884 = vmatpush3.bf16.msra.mxu1 %v1007_v31 }
  0x60   : > { %587 = vmatmul.mubr.bf16.vlgmr.msra.gmra.mxu0 %v1008_v32 }
  0x61   : > { %636 = vmatmul.mubr.bf16.vlgmr.msra.gmra.mxu1 %v1011_v34  ;;  %594 = vmatprep.mubr.bf16.mxu0 %v1014_v36 }
  0x62   : > { %643 = vmatprep.mubr.bf16.mxu1 %v1016_v37 }
  0x68   : > { %595 = vmatmul.mubr.bf16.gmra.mxu0 %v1018_v38 }
  0x69   : > { %644 = vmatmul.mubr.bf16.gmra.mxu1 %v1019_v39 }
 0x120   : > { %v857_v40 = vpop.f32.mrf.mxu0 }
 0x121   : > { %v885_v41 = vpop.f32.mrf.mxu1 }
 0x122   : > { %v858_v43 = vpop.f32.mrf.mxu0 }
 0x123   : > { %v859_v44 = vadd.f32 %v858_v43, %v857_v40  ;;  %v886_v45 = vpop.f32.mrf.mxu1 }
 0x124   : > { %v860_v46 = vpop.f32.mrf.mxu0  ;;  %v887_v48 = vadd.f32 %v886_v45, %v885_v41 }
 0x125   : > { %v589_v47 = vadd.f32 %v859_v44, %v792_v42  ;;  %v888_v49 = vpop.f32.mrf.mxu1 }
 0x126   : > { %v861_v50 = vpop.f32.mrf.mxu0 }
 0x127   : > { %v638_v51 = vadd.f32 %v887_v48, %v589_v47  ;;  %v862_v52 = vadd.f32 %v861_v50, %v860_v46  ;;  %v889_v53 = vpop.f32.mrf.mxu1 }
 0x128   : > { %v863_v54 = vpop.f32.mrf.mxu0  ;;  %v890_v56 = vadd.f32 %v889_v53, %v888_v49 }
 0x129   : > { %652 = vst [vmem:[%s236_s29] sm:$0xff] %v638_v51  ;;  %v592_v55 = vadd.f32 %v862_v52, %v792_v42  ;;  %v891_v57 = vpop.f32.mrf.mxu1 }
 0x12a   : > { %v864_v58 = vpop.f32.mrf.mxu0 }
 0x12b   : > { %v641_v59 = vadd.f32 %v890_v56, %v592_v55  ;;  %v865_v60 = vadd.f32 %v864_v58, %v863_v54  ;;  %v892_v61 = vpop.f32.mrf.mxu1 }
 0x12c   : > { %v866_v62 = vpop.f32.mrf.mxu0  ;;  %v893_v0 = vadd.f32 %v892_v61, %v891_v57 }
 0x12d   : > { %653 = vst [vmem:[%s236_s29 + $0x8] sm:$0xff] %v641_v59  ;;  %v597_v63 = vadd.f32 %v865_v60, %v792_v42  ;;  %v894_v1 = vpop.f32.mrf.mxu1 }
 0x12e   : > { %v867_v2 = vpop.f32.mrf.mxu0 }
 0x12f   : > { %v646_v3 = vadd.f32 %v893_v0, %v597_v63  ;;  %v868_v4 = vadd.f32 %v867_v2, %v866_v62  ;;  %v895_v5 = vpop.f32.mrf.mxu1 }
 0x130   : > { %v896_v7 = vadd.f32 %v895_v5, %v894_v1 }
 0x131   : > { %654 = vst [vmem:[%s236_s29 + $0x10] sm:$0xff] %v646_v3  ;;  %v600_v6 = vadd.f32 %v868_v4, %v792_v42 }
 0x133   : > { %v649_v8 = vadd.f32 %v896_v7, %v600_v6 }
 0x135   : > { %655 = vst [vmem:[%s236_s29 + $0x18] sm:$0xff] %v649_v8 }
 0x136   : > { %1087 = shalt.err (!%p1084_p5)
}
 0x137   : > { %s1088_s26 = scalar_lea.hbm %s1336_s7, 512  ;;  %s1092_s20 = scalar_lea.hbm %s1387_s3, 1024 }
 0x138   : > { %p1089_p7 = scmp.ne.s32.totalorder %s1336_s7, %s1088_s26  ;;  %p1093_p9 = scmp.lt.s32.totalorder %s1336_s7, %s1387_s3 }
 0x139   : > { %p1094_p11 = scmp.lt.s32.totalorder %s1092_s20, %s1088_s26 }
 0x13a   : > { %p1090_p6 = pnand %p1089_p7, %p1276_p13 }
 0x13b   : > { %p1095_p12 = por %p1094_p11, %p1093_p9 }
 0x13c   : > { %p1091_p4 = pneg %p1090_p6 }
 0x13e   : > { %p1096_p1 = pnand %p1095_p12, %p1091_p4 }
 0x140   : > { %1099 = shalt.err (!%p1096_p1)
}
 0x141   : > { %s1167_s29 = smov 128   ;;  %s1168_s21 = smov 8  }
 0x142   : > { %903 = dma.vmem_to_hbm [thread:$0]  (%p1276_p13), %s1331_s4, 512, %s1336_s7, %s657_s10, %s1167_s29, %s1167_s29, %s1168_s21  }
 0x143 PF: > { %s686_s5 = sand.u32 1, %s1138_s12   ;;  %p1399_p8 = scmp.ne.s32.totalorder %s1392_s23, 0 }
 0x144   : > { %p1400_p10 = scmp.ge.s32.totalorder %s1158_s17, 2  ;;  %s687_s6 = scalar_lea.sflag [#allocation4], %s686_s5 }
 0x146   : > { %p914_p0 = pnand %p1400_p10, %p1399_p8 }
 0x148   : > { %p915_p2 = pneg %p914_p0 }
 0x14a   : > { %1133 = dma.done.wait (%p915_p2), %s687_s6, 512  }
 0x14b   : > { %1135 = vsyncadd (%p915_p2), %s687_s6, 4294966784  ;;  %s20_s17 = sadd.s32 1, %s1158_s17   ;;  %s1401_s12 = smov %s1142_s13 }
 0x14c   : > { %p17_p3 = scmp.ge.s32.totalorder %s20_s17, 4   ;;  %s1402_s13 = smov %s1146_s14 }
 0x14d   : > { %s1403_s14 = smov %s1285_s19  ;;  %s1404_s15 = smov %s1154_s16 }
 0x14e   : > { %s1405_s16 = smov %s1407_s28  ;;  %19 = sbr.rel (!%p17_p3) target bundleno = 7 (0x7), region = 85 }
 0x153   :  { %692 = vsyncpa [#allocation3], 1 }
 0x154   :  { %694 = vsyncpa [#allocation3 + $0x1], 1 }
 0x155   :  { %695 = vsyncpa [#allocation6], 1 }
 0x156   :  { %696 = vsyncpa [#allocation4], 1 }
 0x157   :  { %698 = vsyncpa [#allocation4 + $0x1], 1 }

</bundles_post_ra>
